<compile_context>
chip_gen: v7x
topology: tpu7x:2x2x1
jax: 0.10.0
libtpu: 0.0.40
codegen_flags: <defaults>
</compile_context>

<pallas_src>
import numpy as np
import jax
import jax.numpy as jnp
from jax.experimental import pallas as pl
from jax.experimental.pallas import tpu as pltpu

# ----- small, deterministic config -----
B = 8                        # must equal W (see note above)
C_IN = 3                     # encoder.in_chans (== PixelShuffle output channels)
H = W = 8
PATCH = 2                    # encoder.patch_size
STRIDE = 2                   # encoder_stride (== patch_size for this synthetic encoder)
FEAT = 32                    # encoder.num_features
DEC = STRIDE * STRIDE * 3    # decoder Conv2d(1x1) out_channels
HP, WP = H // PATCH, W // PATCH
NP = HP * WP
N_ROWS = B * NP              # 128
PDIM = PATCH * PATCH * C_IN  # 12 (== DEC when STRIDE == PATCH)

# packed patch-slab layout (single lane-dense per-row input):
MASK_COL = PDIM              # col 12: per-patch mask
WM_COL = 16                  # cols 16..27: pre-folded per-element loss weight
SLAB_W = 32

# packed weight-slab row offsets ([SLAB_W + 2*FEAT, FEAT] f32):
ROW_PE = 0                   # rows  0..31: patch embed (rows PDIM..31 zero)
ROW_W1 = SLAB_W              # rows 32..63: MLP
ROW_DEC = SLAB_W + FEAT      # rows 64..95: decoder (cols DEC..31 zero)
W_ROWS = SLAB_W + 2 * FEAT

# TODO(synk): the reference wraps an arbitrary external `encoder`; here we use a
# synthetic encoder (patch-embed linear + mask-token replacement + GELU MLP).
# jax.nn.gelu uses the tanh approximation (PyTorch nn.GELU defaults to exact
# erf); acceptable because the encoder itself is synthetic, not part of the spec.


def _simmim_kernel(p_ref, w_ref, b_ref, o_ref):
    """Fused synthetic encoder + 1x1-conv decoder + PixelShuffle-equivalent
    patch-space masked/weighted L1 loss.  Only the scalar loss is written out."""
    slab = p_ref[...]                                  # [N_ROWS, SLAB_W] f32
    p = slab[:, 0:PDIM]                                # ground-truth patches
    m = slab[:, MASK_COL:MASK_COL + 1]                 # per-patch mask (1 = masked)
    wm = slab[:, WM_COL:WM_COL + PDIM]                 # softmax-wgt * mask / (den * C_IN)

    w_all = w_ref[...]                                 # [96, 32] f32 packed weights
    b_all = b_ref[...]                                 # [4, 32] f32 packed biases
    b_pe, b1, mtok, b_dec = (b_all[0:1, :], b_all[1:2, :],
                             b_all[2:3, :], b_all[3:4, :])

    bf = jnp.bfloat16  # bf16 only at the dot boundary; f32 accumulation + f32 elementwise

    # ---- synthetic encoder: patch embed on the full 32-lane slab (mask / weight /
    # pad lanes hit zero weight rows so they contribute nothing), mask-token
    # replacement, GELU MLP. ----
    emb = jnp.dot(slab.astype(bf), w_all[ROW_PE:ROW_PE + SLAB_W, :].astype(bf),
                  preferred_element_type=jnp.float32) + b_pe
    z = emb * (1.0 - m) + mtok * m
    h = jax.nn.gelu(jnp.dot(z.astype(bf), w_all[ROW_W1:ROW_W1 + FEAT, :].astype(bf),
                            preferred_element_type=jnp.float32) + b1)

    # ---- decoder: Conv2d(kernel_size=1) == per-patch matmul.  PixelShuffle is a
    # pure channel->pixel permutation matching the (c, ph, pw) patch ordering, so
    # dec[:, :PDIM] IS x_rec in patch space (never materialized in NCHW). ----
    dec = jnp.dot(h.astype(bf), w_all[ROW_DEC:ROW_DEC + FEAT, :].astype(bf),
                  preferred_element_type=jnp.float32) + b_dec

    # ---- masked, batch-softmax-weighted L1 loss: the softmax weight, the mask
    # broadcast and 1/(den*C_IN) are all pre-folded into `wm`, so the epilogue
    # is a single weighted reduce and one SMEM scalar store. ----
    o_ref[0, 0] = jnp.sum(jnp.abs(p - dec[:, 0:PDIM]) * wm)


def init_params(key):
    ks = jax.random.split(key, 4)
    w_pe = 0.05 * jax.random.normal(ks[0], (PDIM, FEAT), jnp.float32)
    mask_token = 0.05 * jax.random.normal(ks[1], (1, FEAT), jnp.float32)
    w1 = 0.05 * jax.random.normal(ks[2], (FEAT, FEAT), jnp.float32)
    w_dec = 0.05 * jax.random.normal(ks[3], (FEAT, DEC), jnp.float32)
    b_pe = jnp.zeros((1, FEAT), jnp.float32)
    b1 = jnp.zeros((1, FEAT), jnp.float32)
    b_dec = jnp.zeros((1, DEC), jnp.float32)

    # ---- pack params ONCE into two slabs (review item 1) ----
    # patch-embed rows PDIM..SLAB_W-1 are zero so the mask / loss-weight / pad
    # lanes of the patch slab contribute nothing to the embedding matmul.
    w_pe_ext = jnp.zeros((SLAB_W, FEAT), jnp.float32).at[0:PDIM, :].set(w_pe)
    w_dec_ext = jnp.zeros((FEAT, FEAT), jnp.float32).at[:, 0:DEC].set(w_dec)
    w_slab = jnp.concatenate([w_pe_ext, w1, w_dec_ext], axis=0)           # [96, 32]

    b_dec_ext = jnp.zeros((1, FEAT), jnp.float32).at[:, 0:DEC].set(b_dec)
    b_slab = jnp.concatenate([b_pe, b1, mask_token, b_dec_ext], axis=0)   # [4, 32]
    return dict(w_slab=w_slab, b_slab=b_slab)


def simmim_forward(x, mask, params):
    # Reference semantics: the [B] softmax weight broadcasts against the trailing
    # W axis -> only valid when W == B.  Fail loudly on shape drift.
    assert x.shape[-1] == x.shape[0], "SimMIM reference broadcasting requires W == B"

    # --- glue (fuses into the same tiny XLA fusion as the patch extraction) ---
    # patches in conv/PixelShuffle (c, ph, pw) ordering; rows ordered (b, hp, wp).
    xp = x.reshape(B, C_IN, HP, PATCH, WP, PATCH)
    xp = xp.transpose(0, 2, 4, 1, 3, 5).reshape(N_ROWS, PDIM)
    mp = mask.reshape(N_ROWS, 1).astype(jnp.float32)       # row order matches xp

    # per-batch PIXEL-level mask sums -> batch softmax weight; denominator;
    # [B]-weight map wgt[(n % WP)*PATCH + (d % PATCH)] built from a trace-time
    # constant index; everything folded with the per-patch mask and 1/(den*C_IN)
    # into one per-element loss weight (review items 3 + divide micro-opt).
    s = (PATCH * PATCH) * jnp.sum(mask.reshape(B, -1).astype(jnp.float32), axis=1)  # [B]
    wgt = jax.nn.softmax(s)                                                          # [B]
    den = jnp.sum(s) + 1e-5
    widx = (np.arange(N_ROWS)[:, None] % WP) * PATCH + (np.arange(PDIM)[None, :] % PATCH)
    wm = wgt[widx] * mp * (1.0 / (den * C_IN))                                       # [N, PDIM]

    # single lane-dense per-row slab: [patches | mask | pad | loss-weight | pad]
    pslab = jnp.concatenate(
        [xp, mp,
         jnp.zeros((N_ROWS, WM_COL - PDIM - 1), jnp.float32),
         wm,
         jnp.zeros((N_ROWS, SLAB_W - WM_COL - PDIM), jnp.float32)], axis=1)          # [128, 32]

    # Single gridless invocation: total input data is ~28 KiB, well inside VMEM.
    # Scale-up: add grid=(num_row_tiles,) with dimension_semantics=("parallel",)
    # (2nd TC on v7x + pipelined row tiles) and per-tile partial sums reduced in
    # the wrapper; size tiles against 64 MiB VMEM on v7x via
    # pltpu.CompilerParams(vmem_limit_bytes=...).
    loss = pl.pallas_call(
        _simmim_kernel,
        out_shape=jax.ShapeDtypeStruct((1, 1), jnp.float32),
        in_specs=[pl.BlockSpec(memory_space=pltpu.MemorySpace.VMEM)] * 3,
        out_specs=pl.BlockSpec(memory_space=pltpu.MemorySpace.SMEM),
    )(pslab, params['w_slab'], params['b_slab'])
    return loss[0, 0]


if __name__ == "__main__":
    key = jax.random.PRNGKey(0)
    kx, km, kp = jax.random.split(key, 3)
    x = jax.random.normal(kx, (B, C_IN, H, W), dtype=jnp.float32)
    mask = jax.random.bernoulli(km, 0.5, (B, HP, WP)).astype(jnp.float32)
    params = init_params(kp)

    loss = jax.jit(lambda xx, mm: simmim_forward(xx, mm, params))(x, mask)
    jax.block_until_ready(loss)
    assert loss.shape == () and jnp.isfinite(loss)
    print("KERNEL_OK")
</pallas_src>

<mosaic_0001>
module attributes {stable_mosaic.version = 11 : i64} {
  func.func @_simmim_kernel(%arg0: memref<128x32xf32, #tpu.memory_space<vmem>>, %arg1: memref<96x32xf32, #tpu.memory_space<vmem>>, %arg2: memref<4x32xf32, #tpu.memory_space<vmem>>, %arg3: memref<1x1xf32, #tpu.memory_space<smem>>) attributes {dimension_semantics = [], scalar_prefetch = 0 : i64, scratch_operands = 0 : i64, tpu.core_type = #tpu.core_type<tc>} {
    %c0 = arith.constant 0 : index
    %c0_0 = arith.constant 0 : index
    %0 = vector.load %arg0[%c0, %c0_0] : memref<128x32xf32, #tpu.memory_space<vmem>>, vector<128x32xf32>
    %1 = vector.extract_strided_slice %0 {offsets = [0, 0], sizes = [128, 12], strides = [1, 1]} : vector<128x32xf32> to vector<128x12xf32>
    %2 = vector.extract_strided_slice %0 {offsets = [0, 12], sizes = [128, 1], strides = [1, 1]} : vector<128x32xf32> to vector<128x1xf32>
    %3 = vector.extract_strided_slice %0 {offsets = [0, 16], sizes = [128, 12], strides = [1, 1]} : vector<128x32xf32> to vector<128x12xf32>
    %c0_1 = arith.constant 0 : index
    %c0_2 = arith.constant 0 : index
    %4 = vector.load %arg1[%c0_1, %c0_2] : memref<96x32xf32, #tpu.memory_space<vmem>>, vector<96x32xf32>
    %c0_3 = arith.constant 0 : index
    %c0_4 = arith.constant 0 : index
    %5 = vector.load %arg2[%c0_3, %c0_4] : memref<4x32xf32, #tpu.memory_space<vmem>>, vector<4x32xf32>
    %6 = vector.extract_strided_slice %5 {offsets = [0, 0], sizes = [1, 32], strides = [1, 1]} : vector<4x32xf32> to vector<1x32xf32>
    %7 = vector.extract_strided_slice %5 {offsets = [1, 0], sizes = [1, 32], strides = [1, 1]} : vector<4x32xf32> to vector<1x32xf32>
    %8 = vector.extract_strided_slice %5 {offsets = [2, 0], sizes = [1, 32], strides = [1, 1]} : vector<4x32xf32> to vector<1x32xf32>
    %9 = vector.extract_strided_slice %5 {offsets = [3, 0], sizes = [1, 32], strides = [1, 1]} : vector<4x32xf32> to vector<1x32xf32>
    %10 = arith.truncf %0 : vector<128x32xf32> to vector<128x32xbf16>
    %11 = vector.extract_strided_slice %4 {offsets = [0, 0], sizes = [32, 32], strides = [1, 1]} : vector<96x32xf32> to vector<32x32xf32>
    %12 = arith.truncf %11 : vector<32x32xf32> to vector<32x32xbf16>
    %cst = arith.constant dense<0.000000e+00> : vector<128x32xf32>
    %13 = tpu.matmul %10, %12, %cst {dimension_numbers = #tpu.dot_dimension_numbers<[1], [0], [0], [1], [0, 0, 1, 1], [], []>} : vector<128x32xbf16>, vector<32x32xbf16>, vector<128x32xf32> -> vector<128x32xf32>
    %14 = vector.broadcast %6 : vector<1x32xf32> to vector<128x32xf32>
    %15 = arith.addf %13, %14 : vector<128x32xf32>
    %cst_5 = arith.constant 1.000000e+00 : f32
    %16 = vector.broadcast %cst_5 : f32 to vector<128x1xf32>
    %17 = arith.subf %16, %2 : vector<128x1xf32>
    %18 = vector.broadcast %17 : vector<128x1xf32> to vector<128x32xf32>
    %19 = arith.mulf %15, %18 : vector<128x32xf32>
    %20 = vector.broadcast %8 : vector<1x32xf32> to vector<128x32xf32>
    %21 = vector.broadcast %2 : vector<128x1xf32> to vector<128x32xf32>
    %22 = arith.mulf %20, %21 : vector<128x32xf32>
    %23 = arith.addf %19, %22 : vector<128x32xf32>
    %24 = arith.truncf %23 : vector<128x32xf32> to vector<128x32xbf16>
    %25 = vector.extract_strided_slice %4 {offsets = [32, 0], sizes = [32, 32], strides = [1, 1]} : vector<96x32xf32> to vector<32x32xf32>
    %26 = arith.truncf %25 : vector<32x32xf32> to vector<32x32xbf16>
    %cst_6 = arith.constant dense<0.000000e+00> : vector<128x32xf32>
    %27 = tpu.matmul %24, %26, %cst_6 {dimension_numbers = #tpu.dot_dimension_numbers<[1], [0], [0], [1], [0, 0, 1, 1], [], []>} : vector<128x32xbf16>, vector<32x32xbf16>, vector<128x32xf32> -> vector<128x32xf32>
    %28 = vector.broadcast %7 : vector<1x32xf32> to vector<128x32xf32>
    %29 = arith.addf %27, %28 : vector<128x32xf32>
    %30 = arith.mulf %29, %29 : vector<128x32xf32>
    %31 = arith.mulf %29, %30 : vector<128x32xf32>
    %cst_7 = arith.constant 4.471500e-02 : f32
    %32 = vector.broadcast %cst_7 : f32 to vector<128x32xf32>
    %33 = arith.mulf %32, %31 : vector<128x32xf32>
    %34 = arith.addf %29, %33 : vector<128x32xf32>
    %cst_8 = arith.constant 0.797884583 : f32
    %35 = vector.broadcast %cst_8 : f32 to vector<128x32xf32>
    %36 = arith.mulf %35, %34 : vector<128x32xf32>
    %37 = math.tanh %36 : vector<128x32xf32>
    %cst_9 = arith.constant 1.000000e+00 : f32
    %38 = vector.broadcast %cst_9 : f32 to vector<128x32xf32>
    %39 = arith.addf %38, %37 : vector<128x32xf32>
    %cst_10 = arith.constant 5.000000e-01 : f32
    %40 = vector.broadcast %cst_10 : f32 to vector<128x32xf32>
    %41 = arith.mulf %40, %39 : vector<128x32xf32>
    %42 = arith.mulf %29, %41 : vector<128x32xf32>
    %43 = arith.truncf %42 : vector<128x32xf32> to vector<128x32xbf16>
    %44 = vector.extract_strided_slice %4 {offsets = [64, 0], sizes = [32, 32], strides = [1, 1]} : vector<96x32xf32> to vector<32x32xf32>
    %45 = arith.truncf %44 : vector<32x32xf32> to vector<32x32xbf16>
    %cst_11 = arith.constant dense<0.000000e+00> : vector<128x32xf32>
    %46 = tpu.matmul %43, %45, %cst_11 {dimension_numbers = #tpu.dot_dimension_numbers<[1], [0], [0], [1], [0, 0, 1, 1], [], []>} : vector<128x32xbf16>, vector<32x32xbf16>, vector<128x32xf32> -> vector<128x32xf32>
    %47 = vector.broadcast %9 : vector<1x32xf32> to vector<128x32xf32>
    %48 = arith.addf %46, %47 : vector<128x32xf32>
    %49 = vector.extract_strided_slice %48 {offsets = [0, 0], sizes = [128, 12], strides = [1, 1]} : vector<128x32xf32> to vector<128x12xf32>
    %50 = arith.subf %1, %49 : vector<128x12xf32>
    %51 = math.absf %50 : vector<128x12xf32>
    %52 = arith.mulf %51, %3 : vector<128x12xf32>
    %53 = vector.shape_cast %52 : vector<128x12xf32> to vector<1x128x12xf32>
    %cst_12 = arith.constant dense<0.000000e+00> : vector<1xf32>
    %54 = vector.multi_reduction <add>, %53, %cst_12 [1, 2] : vector<1x128x12xf32> to vector<1xf32>
    %55 = vector.shape_cast %54 : vector<1xf32> to vector<1x1x1xf32>
    %56 = vector.extract %55[0, 0, 0] : f32 from vector<1x1x1xf32>
    %c0_13 = arith.constant 0 : index
    %c0_14 = arith.constant 0 : index
    %57 = memref.load %arg3[%c0_13, %c0_14] : memref<1x1xf32, #tpu.memory_space<smem>>
    memref.store %56, %arg3[%c0_13, %c0_14] : memref<1x1xf32, #tpu.memory_space<smem>>
    return
  }
}

</mosaic_0001>

<bundles_post_ra>
// kernel: mul.10
= control target key start
LH: loop header
LB: loop body
LE: loop exit
PB: predicated region body
PF: predicated region fallthrough
CT: control target
= control target key end

     0   :  { %s280_s22 = smov 116   ;;  %s281_s23 = smov 120   ;;  %vm41_vm0 = vcmask 31744   ;;  %vm47_vm1 = vcmask 1048544   ;;  %vm53_vm2 = vcmask 1015744   ;;  %vm59_vm3 = vcmask 982944   ;;  %s347_s0 = inlined_call_operand.vmem [shape: f32[8,4,4], index: 0, kind: input, shape index: {}]   ;;  %s348_s1 = inlined_call_operand.vmem [shape: f32[128], index: 1, kind: output, shape index: {}]  }
   0x1   :  { %v241_v0 = vld [vmem:[%s347_s0 + $0x1c] sm:$0xf]  ;;  %v242_v1 = vld [vmem:[%s347_s0 + $0x18] sm:$0xf]  ;;  %v243_v2 = vld [vmem:[%s347_s0 + $0x14] sm:$0xf] }
   0x2   :  { %8 = vst [vmem:[#allocation1 + $0x38] sm:$0xf] %v241_v0  ;;  %13 = vst [vmem:[#allocation1 + $0x30] sm:$0xf] %v242_v1  ;;  %v244_v3 = vld [vmem:[%s347_s0 + $0x10] sm:$0xf] }
   0x3   :  { %18 = vst [vmem:[#allocation1 + $0x28] sm:$0xf] %v243_v2  ;;  %23 = vst [vmem:[#allocation1 + $0x20] sm:$0xf] %v244_v3  ;;  %v245_v4 = vld [vmem:[%s347_s0 + $0xc] sm:$0xf] }
   0x4   :  { %v246_v5 = vld [vmem:[%s347_s0 + $0x8] sm:$0xf]  ;;  %28 = vst [vmem:[#allocation1 + $0x18] sm:$0xf] %v245_v4  ;;  %v247_v6 = vld [vmem:[%s347_s0 + $0x4] sm:$0xf] }
   0x5   :  { %33 = vst [vmem:[#allocation1 + $0x10] sm:$0xf] %v246_v5  ;;  %v38_v7 = vld [vmem:[%s347_s0] sm:$0xf]  ;;  %37 = vst [vmem:[#allocation1 + $0x8] sm:$0xf] %v247_v6 }
   0x6   :  { %39 = vst [vmem:[#allocation1] sm:$0xf] %v38_v7  ;;  %s279_s0 = smov 124   ;;  %s282_s24 = smov 112   ;;  %vm65_vm4 = vcmask 950144   ;;  %vm71_vm5 = vcmask 917344  }
   0x7   :  { %s283_s25 = smov 108   ;;  %s284_s26 = smov 104   ;;  %vm77_vm6 = vcmask 884544   ;;  %vm83_vm7 = vcmask 851744   ;;  %vm89_vm8 = vcmask 818944   ;;  %vm95_vm9 = vcmask 786144  }
   0x8   :  { %s285_s27 = smov 100   ;;  %s286_s28 = smov 96   ;;  %vm101_vm10 = vcmask 753344   ;;  %vm107_vm11 = vcmask 720544   ;;  %vm113_vm12 = vcmask 687744   ;;  %vm119_vm13 = vcmask 654944  }
   0x9   :  { %v44_v8 = vld [vmem:[#allocation1 + $0x3b] sm:$0x1]   ;;  %v56_v9 = vld [vmem:[#allocation1 + $0x39] sm:$0x1]   ;;  %v50_v10 = vld [vmem:[#allocation1 + $0x3a] sm:$0x1]  }
   0xa   :  { %45 = vrot.lane.b32.xlu0 %v44_v8, %s279_s0  ;;  %57 = vrot.lane.b32.xlu1 %v56_v9, %s280_s22  ;;  %v62_v11 = vld [vmem:[#allocation1 + $0x38] sm:$0x1]   ;;  %v68_v12 = vld [vmem:[#allocation1 + $0x33] sm:$0x1]   ;;  %v74_v13 = vld [vmem:[#allocation1 + $0x32] sm:$0x1]  }
   0xb   :  { %v80_v14 = vld [vmem:[#allocation1 + $0x31] sm:$0x1]   ;;  %v86_v15 = vld [vmem:[#allocation1 + $0x30] sm:$0x1]   ;;  %v92_v17 = vld [vmem:[#allocation1 + $0x2b] sm:$0x1]  }
   0xc   :  { %v98_v18 = vld [vmem:[#allocation1 + $0x2a] sm:$0x1]   ;;  %s287_s29 = smov 92   ;;  %s288_s30 = smov 88   ;;  %v104_v19 = vld [vmem:[#allocation1 + $0x29] sm:$0x1]  }
   0xd   :  { %v40_v16 = vld [vmem:[#allocation1] sm:$0x1]   ;;  %v110_v20 = vld [vmem:[#allocation1 + $0x28] sm:$0x1]   ;;  %s289_s2 = smov 84   ;;  %s290_s3 = smov 80  }
   0xe   :  { %51 = vrot.lane.b32.xlu0 %v50_v10, %s281_s23  ;;  %63 = vrot.lane.b32.xlu1 %v62_v11, %s282_s24  ;;  %42 = vst.msk [vmem:[#allocation0] sm:$0x1] %vm41_vm0, %v40_v16   ;;  %v116_v21 = vld [vmem:[#allocation1 + $0x23] sm:$0x1]   ;;  %v122_v22 = vld [vmem:[#allocation1 + $0x22] sm:$0x1]  }
   0xf   :  { %s291_s4 = smov 76   ;;  %s292_s5 = smov 72   ;;  %v128_v23 = vld [vmem:[#allocation1 + $0x21] sm:$0x1]   ;;  %v134_v24 = vld [vmem:[#allocation1 + $0x20] sm:$0x1]  }
  0x10   :  { %s293_s6 = smov 68   ;;  %s294_s7 = smov 64   ;;  %v140_v25 = vld [vmem:[#allocation1 + $0x1b] sm:$0x1]   ;;  %v146_v26 = vld [vmem:[#allocation1 + $0x1a] sm:$0x1]  }
  0x11   :  { %s295_s8 = smov 60   ;;  %s296_s9 = smov 56   ;;  %v152_v27 = vld [vmem:[#allocation1 + $0x19] sm:$0x1]   ;;  %v158_v28 = vld [vmem:[#allocation1 + $0x18] sm:$0x1]  }
  0x12   :  { %69 = vrot.lane.b32.xlu0 %v68_v12, %s283_s25  ;;  %75 = vrot.lane.b32.xlu1 %v74_v13, %s284_s26  ;;  %s297_s10 = smov 52   ;;  %s298_s11 = smov 48   ;;  %v164_v29 = vld [vmem:[#allocation1 + $0x13] sm:$0x1]   ;;  %v170_v30 = vld [vmem:[#allocation1 + $0x12] sm:$0x1]  }
  0x13   :  { %s299_s12 = smov 44   ;;  %s300_s13 = smov 40   ;;  %v176_v31 = vld [vmem:[#allocation1 + $0x11] sm:$0x1]   ;;  %v182_v32 = vld [vmem:[#allocation1 + $0x10] sm:$0x1]  }
  0x14   :  { %s301_s14 = smov 36   ;;  %s302_s15 = smov 32   ;;  %v188_v33 = vld [vmem:[#allocation1 + $0xb] sm:$0x1]   ;;  %v194_v34 = vld [vmem:[#allocation1 + $0xa] sm:$0x1]  }
  0x15   :  { %s303_s16 = smov 28   ;;  %s304_s17 = smov 24   ;;  %v200_v35 = vld [vmem:[#allocation1 + $0x9] sm:$0x1]   ;;  %v206_v36 = vld [vmem:[#allocation1 + $0x8] sm:$0x1]  }
  0x16   :  { %81 = vrot.lane.b32.xlu0 %v80_v14, %s285_s27  ;;  %87 = vrot.lane.b32.xlu1 %v86_v15, %s286_s28  ;;  %s305_s18 = smov 20   ;;  %s306_s19 = smov 16   ;;  %v212_v37 = vld [vmem:[#allocation1 + $0x3] sm:$0x1]   ;;  %v218_v38 = vld [vmem:[#allocation1 + $0x2] sm:$0x1]  }
  0x17   :  { %s307_s20 = smov 12   ;;  %s308_s21 = smov 8   ;;  %v224_v39 = vld [vmem:[#allocation1 + $0x1] sm:$0x1]   ;;  %vm125_vm14 = vcmask 622144   ;;  %vm131_vm15 = vcmask 589344  }
  0x18   :  { %s309_s0 = smov 4   ;;  %vm137_vm0 = vcmask 556544  }
  0x1a   :  { %93 = vrot.lane.b32.xlu0 %v92_v17, %s287_s29  ;;  %99 = vrot.lane.b32.xlu1 %v98_v18, %s288_s30 }
  0x1e   :  { %105 = vrot.lane.b32.xlu0 %v104_v19, %s289_s2  ;;  %111 = vrot.lane.b32.xlu1 %v110_v20, %s290_s3 }
  0x22   :  { %117 = vrot.lane.b32.xlu0 %v116_v21, %s291_s4  ;;  %123 = vrot.lane.b32.xlu1 %v122_v22, %s292_s5 }
  0x26   :  { %129 = vrot.lane.b32.xlu0 %v128_v23, %s293_s6  ;;  %135 = vrot.lane.b32.xlu1 %v134_v24, %s294_s7 }
  0x2a   :  { %141 = vrot.lane.b32.xlu0 %v140_v25, %s295_s8  ;;  %147 = vrot.lane.b32.xlu1 %v146_v26, %s296_s9 }
  0x2e   :  { %153 = vrot.lane.b32.xlu0 %v152_v27, %s297_s10  ;;  %159 = vrot.lane.b32.xlu1 %v158_v28, %s298_s11 }
  0x32   :  { %165 = vrot.lane.b32.xlu0 %v164_v29, %s299_s12  ;;  %171 = vrot.lane.b32.xlu1 %v170_v30, %s300_s13 }
  0x36   :  { %177 = vrot.lane.b32.xlu0 %v176_v31, %s301_s14  ;;  %183 = vrot.lane.b32.xlu1 %v182_v32, %s302_s15 }
  0x3a   :  { %189 = vrot.lane.b32.xlu0 %v188_v33, %s303_s16  ;;  %195 = vrot.lane.b32.xlu1 %v194_v34, %s304_s17 }
  0x3e   :  { %201 = vrot.lane.b32.xlu0 %v200_v35, %s305_s18  ;;  %207 = vrot.lane.b32.xlu1 %v206_v36, %s306_s19 }
  0x42   :  { %213 = vrot.lane.b32.xlu0 %v212_v37, %s307_s20  ;;  %219 = vrot.lane.b32.xlu1 %v218_v38, %s308_s21 }
  0x46   :  { %225 = vrot.lane.b32.xlu0 %v224_v39, %s309_s0 }
  0x7c   :  { %v46_v40 = vpop.permute.xlu0 %45   ;;  %v58_v41 = vpop.permute.xlu1 %57  }
  0x7d   :  { %48 = vst.msk [vmem:[#allocation0] sm:$0x1] %vm47_vm1, %v46_v40   ;;  %vm143_vm1 = vcmask 523744  }
  0x80   :  { %v52_v42 = vpop.permute.xlu0 %51   ;;  %v64_v43 = vpop.permute.xlu1 %63  }
  0x81   :  { %54 = vst.msk [vmem:[#allocation0] sm:$0x1] %vm53_vm2, %v52_v42   ;;  %vm149_vm2 = vcmask 490944  }
  0x82   :  { %60 = vst.msk [vmem:[#allocation0] sm:$0x1] %vm59_vm3, %v58_v41   ;;  %vm155_vm3 = vcmask 458144  }
  0x83   :  { %66 = vst.msk [vmem:[#allocation0] sm:$0x1] %vm65_vm4, %v64_v43   ;;  %vm161_vm4 = vcmask 425344  }
  0x84   :  { %v70_v44 = vpop.permute.xlu0 %69   ;;  %v76_v45 = vpop.permute.xlu1 %75  }
  0x85   :  { %72 = vst.msk [vmem:[#allocation0] sm:$0x1] %vm71_vm5, %v70_v44   ;;  %vm167_vm5 = vcmask 392544  }
  0x86   :  { %78 = vst.msk [vmem:[#allocation0] sm:$0x1] %vm77_vm6, %v76_v45   ;;  %vm173_vm6 = vcmask 359744  }
  0x88   :  { %v82_v46 = vpop.permute.xlu0 %81   ;;  %v88_v47 = vpop.permute.xlu1 %87  }
  0x89   :  { %84 = vst.msk [vmem:[#allocation0] sm:$0x1] %vm83_vm7, %v82_v46   ;;  %vm179_vm7 = vcmask 326944  }
  0x8a   :  { %90 = vst.msk [vmem:[#allocation0] sm:$0x1] %vm89_vm8, %v88_v47   ;;  %vm185_vm8 = vcmask 294144  }
  0x8c   :  { %v94_v48 = vpop.permute.xlu0 %93   ;;  %v100_v49 = vpop.permute.xlu1 %99  }
  0x8d   :  { %96 = vst.msk [vmem:[#allocation0] sm:$0x1] %vm95_vm9, %v94_v48   ;;  %vm191_vm9 = vcmask 261344  }
  0x8e   :  { %102 = vst.msk [vmem:[#allocation0] sm:$0x1] %vm101_vm10, %v100_v49   ;;  %vm197_vm10 = vcmask 228544  }
  0x90   :  { %v106_v50 = vpop.permute.xlu0 %105   ;;  %v112_v51 = vpop.permute.xlu1 %111  }
  0x91   :  { %108 = vst.msk [vmem:[#allocation0] sm:$0x1] %vm107_vm11, %v106_v50   ;;  %vm203_vm11 = vcmask 195744  }
  0x92   :  { %114 = vst.msk [vmem:[#allocation0] sm:$0x1] %vm113_vm12, %v112_v51   ;;  %vm209_vm12 = vcmask 162944  }
  0x94   :  { %v118_v52 = vpop.permute.xlu0 %117   ;;  %v124_v53 = vpop.permute.xlu1 %123  }
  0x95   :  { %120 = vst.msk [vmem:[#allocation0] sm:$0x1] %vm119_vm13, %v118_v52   ;;  %vm215_vm13 = vcmask 130144  }
  0x96   :  { %126 = vst.msk [vmem:[#allocation0] sm:$0x1] %vm125_vm14, %v124_v53   ;;  %vm221_vm14 = vcmask 97344  }
  0x98   :  { %v130_v54 = vpop.permute.xlu0 %129   ;;  %v136_v55 = vpop.permute.xlu1 %135  }
  0x99   :  { %132 = vst.msk [vmem:[#allocation0] sm:$0x1] %vm131_vm15, %v130_v54   ;;  %vm227_vm15 = vcmask 64544  }
  0x9a   :  { %138 = vst.msk [vmem:[#allocation0] sm:$0x1] %vm137_vm0, %v136_v55  }
  0x9c   :  { %v142_v56 = vpop.permute.xlu0 %141   ;;  %v148_v57 = vpop.permute.xlu1 %147  }
  0x9d   :  { %144 = vst.msk [vmem:[#allocation0] sm:$0x1] %vm143_vm1, %v142_v56  }
  0x9e   :  { %150 = vst.msk [vmem:[#allocation0] sm:$0x1] %vm149_vm2, %v148_v57  }
  0xa0   :  { %v154_v58 = vpop.permute.xlu0 %153   ;;  %v160_v59 = vpop.permute.xlu1 %159  }
  0xa1   :  { %156 = vst.msk [vmem:[#allocation0] sm:$0x1] %vm155_vm3, %v154_v58  }
  0xa2   :  { %162 = vst.msk [vmem:[#allocation0] sm:$0x1] %vm161_vm4, %v160_v59  }
  0xa4   :  { %v166_v60 = vpop.permute.xlu0 %165   ;;  %v172_v61 = vpop.permute.xlu1 %171  }
  0xa5   :  { %168 = vst.msk [vmem:[#allocation0] sm:$0x1] %vm167_vm5, %v166_v60  }
  0xa6   :  { %174 = vst.msk [vmem:[#allocation0] sm:$0x1] %vm173_vm6, %v172_v61  }
  0xa8   :  { %v178_v62 = vpop.permute.xlu0 %177   ;;  %v184_v63 = vpop.permute.xlu1 %183  }
  0xa9   :  { %180 = vst.msk [vmem:[#allocation0] sm:$0x1] %vm179_vm7, %v178_v62  }
  0xaa   :  { %186 = vst.msk [vmem:[#allocation0] sm:$0x1] %vm185_vm8, %v184_v63  }
  0xac   :  { %v190_v0 = vpop.permute.xlu0 %189   ;;  %v196_v1 = vpop.permute.xlu1 %195  }
  0xad   :  { %192 = vst.msk [vmem:[#allocation0] sm:$0x1] %vm191_vm9, %v190_v0  }
  0xae   :  { %198 = vst.msk [vmem:[#allocation0] sm:$0x1] %vm197_vm10, %v196_v1  }
  0xb0   :  { %v202_v2 = vpop.permute.xlu0 %201   ;;  %v208_v3 = vpop.permute.xlu1 %207  }
  0xb1   :  { %204 = vst.msk [vmem:[#allocation0] sm:$0x1] %vm203_vm11, %v202_v2  }
  0xb2   :  { %210 = vst.msk [vmem:[#allocation0] sm:$0x1] %vm209_vm12, %v208_v3  }
  0xb4   :  { %v214_v4 = vpop.permute.xlu0 %213   ;;  %v220_v5 = vpop.permute.xlu1 %219  }
  0xb5   :  { %216 = vst.msk [vmem:[#allocation0] sm:$0x1] %vm215_vm13, %v214_v4  }
  0xb6   :  { %222 = vst.msk [vmem:[#allocation0] sm:$0x1] %vm221_vm14, %v220_v5  }
  0xb8   :  { %v226_v6 = vpop.permute.xlu0 %225  }
  0xb9   :  { %228 = vst.msk [vmem:[#allocation0] sm:$0x1] %vm227_vm15, %v226_v6  }
  0xc0   :  { %v232_v7 = vld [vmem:[#allocation0] sm:$0x1] }
  0xc1   :  { %234 = vst [vmem:[%s348_s1] sm:$0x1] %v232_v7 }

// kernel: _lambda_.1
= control target key start
LH: loop header
LB: loop body
LE: loop exit
PB: predicated region body
PF: predicated region fallthrough
CT: control target
= control target key end

     0   :  { %v1152_v4 = vmov 12   ;;  %vm59_vm0 = vcmask 261120   ;;  %s1683_s0 = inlined_call_operand.vmem [shape: f32[128,32], index: 0, kind: input, shape index: {}]   ;;  %s1684_s1 = inlined_call_operand.vmem [shape: f32[96,32], index: 1, kind: input, shape index: {}]   ;;  %s1685_s2 = inlined_call_operand.vmem [shape: f32[4,32], index: 2, kind: input, shape index: {}]   ;;  %s1686_s3 = inlined_call_operand.hbm [shape: f32[1,1], index: 3, kind: output, shape index: {}]  }
   0x1   :  { %v32_v0 = vld [vmem:[%s1684_s1] sm:$0xff]  ;;  %v33_v1 = vld [vmem:[%s1684_s1 + $0x8] sm:$0xff]  ;;  %1099 = vset.pattern.permute.xlu1 %v1152_v4  ;;  %1098 = vset.pattern.permute.xlu0 %v1152_v4  ;;  %v34_v6 = vld [vmem:[%s1684_s1 + $0x10] sm:$0xff] }
   0x2   :  { %v1184_v2 = vld [vmem:[%s1683_s0] sm:$0xff]  ;;  %v53_v3 = vpack.c.bf16 %v33_v1, %v32_v0  ;;  %v35_v7 = vld [vmem:[%s1684_s1 + $0x18] sm:$0xff]  ;;  %v1196_v8 = vld [vmem:[%s1683_s0 + $0x8] sm:$0xff] }
   0x3   :  { %v181_v5 = vsub.f32 1.0, %v1184_v2  ;;  %299 = vperm.xlu1 %1099, %v1184_v2   ;;  %v54_v9 = vpack.c.bf16 %v35_v7, %v34_v6  ;;  %v1202_v10 = vld [vmem:[%s1683_s0 + $0x40] sm:$0xff]  ;;  %v1207_v11 = vld [vmem:[%s1683_s0 + $0x48] sm:$0xff]  ;;  %v45_v12 = vpack.c.bf16 %v1196_v8, %v1184_v2  ;;  %v1216_v14 = vld [vmem:[%s1683_s0 + $0x10] sm:$0xff]  ;;  %v182_v19 = vsub.f32 1.0, %v1196_v8 }
   0x4   :  { %1029 = vmatprep.subr.bf16.mxu0 %v53_v3  ;;  %1089 = vmatprep.subr.bf16.mxu1 %v53_v3  ;;  %v49_v13 = vpack.c.bf16 %v1207_v11, %v1202_v10  ;;  %v1221_v15 = vld [vmem:[%s1683_s0 + $0x18] sm:$0xff]  ;;  %v1226_v16 = vld [vmem:[%s1683_s0 + $0x50] sm:$0xff]  ;;  %v1236_v18 = vld [vmem:[%s1683_s0 + $0x20] sm:$0xff] }
   0x5   :  { %1030 = vmatpush3.bf16.msra.mxu0 %v53_v3  ;;  %1091 = vmatpush3.bf16.msra.mxu1 %v53_v3  ;;  %v1231_v17 = vld [vmem:[%s1683_s0 + $0x58] sm:$0xff]  ;;  %v1242_v20 = vld [vmem:[%s1683_s0 + $0x28] sm:$0xff]  ;;  %v1247_v21 = vld [vmem:[%s1683_s0 + $0x60] sm:$0xff]  ;;  %v184_v23 = vsub.f32 1.0, %v1221_v15  ;;  %v46_v24 = vpack.c.bf16 %v1221_v15, %v1216_v14 }
   0x6   :  { %1696 = vst [vmem:[#allocation5_spill] sm:$0xff] %v1231_v17  ;;  %199 = vperm.xlu0 %1098, %v181_v5   ;;  %1031 = vmatprep.subr.bf16.mxu0 %v54_v9  ;;  %1697 = vst [vmem:[#allocation6_spill] sm:$0xff] %v1247_v21  ;;  %v1252_v22 = vld [vmem:[%s1683_s0 + $0x68] sm:$0xff]  ;;  %v50_v25 = vpack.c.bf16 %v1231_v17, %v1226_v16 }
   0x7   :  { %1698 = vst [vmem:[#allocation7_spill] sm:$0xff] %v1252_v22  ;;  %1090 = vmatprep.subr.bf16.mxu1 %v54_v9  ;;  %304 = vperm.xlu1 %1099, %v1196_v8  }
   0x8   :  { %1033 = vmatprep.mubr.msk.bf16.mxu0 %vm59_vm0, %v45_v12  ;;  %1041 = vmatprep.mubr.msk.bf16.mxu1 %vm59_vm0, %v49_v13 }
   0x9   :  { %8 = vsyncpa [#allocation3], 0  ;;  %1032 = vmatpush3.bf16.msra.mxu0 %v54_v9  ;;  %1092 = vmatpush3.bf16.msra.mxu1 %v54_v9  ;;  %v47_v26 = vpack.c.bf16 %v1242_v20, %v1236_v18  ;;  %v51_v27 = vpack.c.bf16 %v1252_v22, %v1247_v21  ;;  %v183_v28 = vsub.f32 1.0, %v1216_v14  ;;  %v1272_v29 = vld [vmem:[%s1683_s0 + $0x30] sm:$0xff]  ;;  %v1279_v30 = vld [vmem:[%s1683_s0 + $0x38] sm:$0xff]  ;;  %v186_v33 = vsub.f32 1.0, %v1242_v20 }
   0xa   :  { %204 = vperm.xlu0 %1098, %v182_v19   ;;  %v1284_v31 = vld [vmem:[%s1683_s0 + $0x70] sm:$0xff]  ;;  %v1289_v32 = vld [vmem:[%s1683_s0 + $0x78] sm:$0xff]  ;;  %v48_v34 = vpack.c.bf16 %v1279_v30, %v1272_v29  ;;  %v185_v36 = vsub.f32 1.0, %v1236_v18  ;;  %v188_v37 = vsub.f32 1.0, %v1279_v30  ;;  %v187_v38 = vsub.f32 1.0, %v1272_v29  ;;  %v36_v47 = vld [vmem:[%s1684_s1 + $0x20] sm:$0xff] }
   0xb   :  { %214 = vperm.xlu1 %1099, %v184_v23   ;;  %1699 = vst [vmem:[#allocation8_spill] sm:$0xff] %v1284_v31  ;;  %1700 = vst [vmem:[#allocation9_spill] sm:$0xff] %v1289_v32  ;;  %v52_v35 = vpack.c.bf16 %v1289_v32, %v1284_v31  ;;  %v190_v39 = vsub.f32 1.0, %v1207_v11  ;;  %v189_v40 = vsub.f32 1.0, %v1202_v10  ;;  %v192_v41 = vsub.f32 1.0, %v1231_v17  ;;  %v37_v48 = vld [vmem:[%s1684_s1 + $0x28] sm:$0xff] }
   0xc   :  { %1034 = vmatmul.mubr.msk.bf16.vlgmr.msra.gmra.mrb[0].mxu0 %vm59_vm0, %v46_v24  ;;  %1042 = vmatmul.mubr.msk.bf16.vlgmr.msra.gmra.mrb[0].mxu1 %vm59_vm0, %v50_v25  ;;  %v191_v42 = vsub.f32 1.0, %v1226_v16  ;;  %v194_v43 = vsub.f32 1.0, %v1252_v22  ;;  %v193_v44 = vsub.f32 1.0, %v1247_v21  ;;  %v196_v45 = vsub.f32 1.0, %v1289_v32  ;;  %v38_v50 = vld [vmem:[%s1684_s1 + $0x30] sm:$0xff]  ;;  %v39_v51 = vld [vmem:[%s1684_s1 + $0x38] sm:$0xff] }
   0xd   :  { %1037 = vmatprep.mubr.msk.bf16.mxu0 %vm59_vm0, %v47_v26  ;;  %1045 = vmatprep.mubr.msk.bf16.mxu1 %vm59_vm0, %v51_v27  ;;  %v195_v46 = vsub.f32 1.0, %v1284_v31  ;;  %v417_v49 = vpack.c.bf16 %v37_v48, %v36_v47  ;;  %v418_v52 = vpack.c.bf16 %v39_v51, %v38_v50  ;;  %v55_v25 = vlaneseq  ;;  %s1153_s15 = smov 112   ;;  %s1140_s6 = scalar_lea.hbm %s1686_s3, 16 }
   0xe   :  { %209 = vperm.xlu0 %1098, %v183_v28   ;;  %vm919_vm1 = vcmask 97280   ;;  %p1141_p0 = scmp.ne.s32.totalorder %s1686_s3, %s1140_s6  ;;  %p1144_p1 = scmp.lt.u32.totalorder %s1140_s6, %s1686_s3 }
   0xf   :  { %314 = vperm.xlu1 %1099, %v1221_v15   ;;  %1049 = vmatprep.subr.bf16.mxu1 %v417_v49  ;;  %v1351_v28 = vshrl.u32 %v55_v25, 7 }
  0x10   :  { %1050 = vmatpush3.bf16.msra.mxu1 %v417_v49  ;;  %p1146_p2 = pnand %p1144_p1, %p1141_p0 }
  0x11   :  { %1051 = vmatprep.subr.bf16.mxu1 %v418_v52  ;;  %1701 = vst [vmem:[#allocation10_spill] sm:$0xff] %v1351_v28 }
  0x12   :  { %309 = vperm.xlu0 %1098, %v1216_v14  }
  0x13   :  { %224 = vperm.xlu1 %1099, %v186_v33   ;;  %v295_v33 = vsub.s32 2, %v1351_v28 }
  0x14   :  { %1038 = vmatmul.mubr.msk.bf16.gmra.mrb[4].mxu0 %vm59_vm0, %v48_v34  ;;  %1046 = vmatmul.mubr.msk.bf16.gmra.mrb[4].mxu1 %vm59_vm0, %v52_v35  ;;  %v1357_v34 = vld [vmem:[%s1685_s2] sm:$0xf] }
  0x15   :  { %1052 = vmatpush3.bf16.msra.mxu1 %v418_v52  ;;  %1702 = vst [vmem:[#allocation11_spill] sm:$0xff] %v1357_v34 }
  0x16   :  { %219 = vperm.xlu0 %1098, %v185_v36  }
  0x17   :  { %324 = vperm.xlu1 %1099, %v1242_v20  }
  0x1a   :  { %319 = vperm.xlu0 %1098, %v1236_v18  }
  0x1b   :  { %234 = vperm.xlu1 %1099, %v188_v37   ;;  %v57_v37 = vsub.s32 0, %v1351_v28 }
  0x1e   :  { %229 = vperm.xlu0 %1098, %v187_v38   ;;  %v1365_v38 = vrot.slane %v1357_v34, %v295_v33 }
  0x1f   :  { %334 = vperm.xlu1 %1099, %v1279_v30  }
  0x22   :  { %329 = vperm.xlu0 %1098, %v1272_v29  }
  0x23   :  { %244 = vperm.xlu1 %1099, %v190_v39   ;;  %v1368_v39 = vrot.slane %v1357_v34, %v57_v37 }
  0x26   :  { %239 = vperm.xlu0 %1098, %v189_v40  }
  0x27   :  { %344 = vperm.xlu1 %1099, %v1207_v11  }
  0x2a   :  { %339 = vperm.xlu0 %1098, %v1202_v10  }
  0x2b   :  { %254 = vperm.xlu1 %1099, %v192_v41  }
  0x2e   :  { %249 = vperm.xlu0 %1098, %v191_v42  }
  0x2f   :  { %354 = vperm.xlu1 %1099, %v1231_v17  }
  0x32   :  { %349 = vperm.xlu0 %1098, %v1226_v16  }
  0x33   :  { %264 = vperm.xlu1 %1099, %v194_v43  }
  0x36   :  { %259 = vperm.xlu0 %1098, %v193_v44  }
  0x37   :  { %364 = vperm.xlu1 %1099, %v1252_v22  }
  0x3a   :  { %359 = vperm.xlu0 %1098, %v1247_v21  }
  0x3b   :  { %274 = vperm.xlu1 %1099, %v196_v45  }
  0x3e   :  { %269 = vperm.xlu0 %1098, %v195_v46  }
  0x3f   :  { %374 = vperm.xlu1 %1099, %v1289_v32  }
  0x42   :  { %369 = vperm.xlu0 %1098, %v1284_v31  }
  0x43   :  { %857 = vrot.lane.b32.xlu1 %v1196_v8, %s1153_s15 }
  0x46   :  { %855 = vrot.lane.b32.xlu0 %v1184_v2, %s1153_s15 }
  0x47   :  { %861 = vrot.lane.b32.xlu1 %v1221_v15, %s1153_s15 }
  0x4a   :  { %859 = vrot.lane.b32.xlu0 %v1216_v14, %s1153_s15 }
  0x4b   :  { %865 = vrot.lane.b32.xlu1 %v1242_v20, %s1153_s15 }
  0x4e   :  { %863 = vrot.lane.b32.xlu0 %v1236_v18, %s1153_s15 }
  0x4f   :  { %869 = vrot.lane.b32.xlu1 %v1279_v30, %s1153_s15 }
  0x52   :  { %867 = vrot.lane.b32.xlu0 %v1272_v29, %s1153_s15 }
  0x53   :  { %873 = vrot.lane.b32.xlu1 %v1207_v11, %s1153_s15 }
  0x56   :  { %871 = vrot.lane.b32.xlu0 %v1202_v10, %s1153_s15 }
  0x5a   :  { %875 = vrot.lane.b32.xlu0 %v1226_v16, %s1153_s15 }
  0x82   :  { %v300_v53 = vpop.permute.xlu1 %299 }
  0x83   :  { %v377_v42 = vmul.f32 %v300_v53, %v1365_v38 }
  0x85   :  { %v200_v54 = vpop.permute.xlu0 %199 }
  0x86   :  { %v305_v55 = vpop.permute.xlu1 %304 }
  0x87   :  { %v378_v43 = vmul.f32 %v305_v55, %v1365_v38 }
  0x89   :  { %v1335_v56 = vpop.permute.xlu0 %204 }
  0x8a   :  { %v1337_v57 = vpop.permute.xlu1 %214 }
  0x8d   :  { %v210_v58 = vpop.permute.xlu0 %209 }
  0x8e   :  { %v315_v59 = vpop.permute.xlu1 %314 }
  0x8f   :  { %v380_v44 = vmul.f32 %v315_v59, %v1365_v38 }
  0x91   :  { %v310_v60 = vpop.permute.xlu0 %309 }
  0x92   :  { %v1339_v61 = vpop.permute.xlu1 %224  ;;  %v379_v45 = vmul.f32 %v310_v60, %v1365_v38 }
  0x95   :  { %v1341_v62 = vpop.permute.xlu0 %219 }
  0x96   :  { %v325_v63 = vpop.permute.xlu1 %324 }
  0x97   :  { %v1377_v48 = vmul.f32 %v325_v63, %v1365_v38 }
  0x99   :  { %v320_v0 = vpop.permute.xlu0 %319 }
  0x9a   :  { %v1343_v1 = vpop.permute.xlu1 %234  ;;  %v1380_v49 = vmul.f32 %v320_v0, %v1365_v38 }
  0x9d   :  { %v1345_v3 = vpop.permute.xlu0 %229 }
  0x9e   :  { %v335_v4 = vpop.permute.xlu1 %334 }
  0x9f   :  { %v1385_v55 = vmul.f32 %v335_v4, %v1365_v38 }
  0xa1   :  { %v330_v5 = vpop.permute.xlu0 %329 }
  0xa2   :  { %v245_v6 = vpop.permute.xlu1 %244  ;;  %v1388_v59 = vmul.f32 %v330_v5, %v1365_v38 }
  0xa5   :  { %v240_v7 = vpop.permute.xlu0 %239 }
  0xa6   :  { %v345_v9 = vpop.permute.xlu1 %344 }
  0xa9   :  { %v340_v12 = vpop.permute.xlu0 %339 }
  0xaa   :  { %v255_v13 = vpop.permute.xlu1 %254 }
  0xad   :  { %v250_v19 = vpop.permute.xlu0 %249 }
  0xae   :  { %v355_v23 = vpop.permute.xlu1 %354 }
  0xb1   :  { %v350_v24 = vpop.permute.xlu0 %349 }
  0xb2   :  { %v1347_v26 = vpop.permute.xlu1 %264 }
  0xb5   :  { %v1349_v27 = vpop.permute.xlu0 %259 }
  0xb6   :  { %v1359_v35 = vpop.permute.xlu1 %364 }
  0xb9   :  { %v1361_v36 = vpop.permute.xlu0 %359 }
  0xba   :  { %v1370_v40 = vpop.permute.xlu1 %274 }
  0xbd   :  { %v270_v41 = vpop.permute.xlu0 %269 }
  0xdf   :  { %v1035_v46 = vpop.f32.mrb[0].mxu0  ;;  %v1043_v47 = vpop.f32.mrb[0].mxu1 }
  0xe0   :  { %v127_v50 = vadd.f32 %v1035_v46, %v1368_v39  ;;  %v159_v51 = vadd.f32 %v1043_v47, %v1368_v39  ;;  %v118_v52 = vpop.f32.mrb[1].mxu0  ;;  %v150_v53 = vpop.f32.mrb[1].mxu1 }
  0xe1   :  { %v119_v60 = vadd.f32 %v118_v52, %v1368_v39  ;;  %v151_v63 = vadd.f32 %v150_v53, %v1368_v39  ;;  %v1036_v25 = vpop.f32.mrb[2].mxu0  ;;  %v1044_v33 = vpop.f32.mrb[2].mxu1  ;;  %v388_v52 = vmul.f32 %v355_v23, %v1365_v38  ;;  %v387_v53 = vmul.f32 %v350_v24, %v1365_v38 }
  0xe2   :  { %v279_v0 = vmul.f32 %v210_v58, %v127_v50  ;;  %v287_v37 = vmul.f32 %v250_v19, %v159_v51  ;;  %v130_v46 = vadd.f32 %v1036_v25, %v1368_v39  ;;  %v162_v47 = vadd.f32 %v1044_v33, %v1368_v39  ;;  %v121_v34 = vpop.f32.mrb[3].mxu0  ;;  %v153_v28 = vpop.f32.mrb[3].mxu1 }
  0xe3   :  { %v277_v32 = vmul.f32 %v200_v54, %v119_v60  ;;  %v285_v4 = vmul.f32 %v240_v7, %v151_v63  ;;  %v122_v31 = vadd.f32 %v121_v34, %v1368_v39  ;;  %v154_v5 = vadd.f32 %v153_v28, %v1368_v39  ;;  %v375_v54 = vpop.permute.xlu1 %374  ;;  %v370_v7 = vpop.permute.xlu0 %369 }
  0xe4   :  { %v280_v22 = vmul.f32 %v1337_v57, %v130_v46  ;;  %v288_v58 = vmul.f32 %v255_v13, %v162_v47  ;;  %v386_v19 = vmul.f32 %v345_v9, %v1365_v38  ;;  %v385_v50 = vmul.f32 %v340_v12, %v1365_v38 }
  0xe5   :  { %v278_v51 = vmul.f32 %v1335_v56, %v122_v31  ;;  %v286_v25 = vmul.f32 %v245_v6, %v154_v5  ;;  %v395_v60 = vadd.f32 %v379_v45, %v279_v0  ;;  %v403_v34 = vadd.f32 %v387_v53, %v287_v37 }
  0xe6   :  { %v396_v63 = vadd.f32 %v380_v44, %v280_v22  ;;  %v404_v28 = vadd.f32 %v388_v52, %v288_v58  ;;  %v393_v33 = vadd.f32 %v377_v42, %v277_v32  ;;  %v401_v23 = vadd.f32 %v385_v50, %v285_v4 }
  0xe7   :  { %v394_v21 = vadd.f32 %v378_v43, %v278_v51  ;;  %v402_v24 = vadd.f32 %v386_v19, %v286_v25  ;;  %v1039_v17 = vpop.f32.mrb[4].mxu0  ;;  %v1047_v57 = vpop.f32.mrb[4].mxu1  ;;  %v392_v58 = vmul.f32 %v375_v54, %v1365_v38 }
  0xe8   :  { %v410_v13 = vpack.c.bf16 %v396_v63, %v395_v60  ;;  %v414_v46 = vpack.c.bf16 %v404_v28, %v403_v34  ;;  %v143_v9 = vadd.f32 %v1039_v17, %v1368_v39  ;;  %v175_v12 = vadd.f32 %v1047_v57, %v1368_v39  ;;  %v134_v31 = vpop.f32.mrb[5].mxu0  ;;  %v166_v56 = vpop.f32.mrb[5].mxu1  ;;  %v1707_v57 = vld [vmem:[#allocation9_spill] sm:$0xff] }
  0xe9   :  { %v409_v6 = vpack.c.bf16 %v394_v21, %v393_v33  ;;  %v413_v47 = vpack.c.bf16 %v402_v24, %v401_v23  ;;  %v135_v45 = vadd.f32 %v134_v31, %v1368_v39  ;;  %v167_v22 = vadd.f32 %v166_v56, %v1368_v39  ;;  %v1040_v32 = vpop.f32.mrb[6].mxu0  ;;  %v1048_v42 = vpop.f32.mrb[6].mxu1  ;;  %v1704_v33 = vld [vmem:[#allocation6_spill] sm:$0xff]  ;;  %v1705_v23 = vld [vmem:[#allocation7_spill] sm:$0xff]  ;;  %v1706_v24 = vld [vmem:[#allocation8_spill] sm:$0xff] }
  0xea   :  { %v283_v43 = vmul.f32 %v1345_v3, %v143_v9  ;;  %v291_v44 = vmul.f32 %v270_v41, %v175_v12  ;;  %v146_v0 = vadd.f32 %v1040_v32, %v1368_v39  ;;  %v178_v37 = vadd.f32 %v1048_v42, %v1368_v39  ;;  %v137_v17 = vpop.f32.mrb[7].mxu0  ;;  %v169_v4 = vpop.f32.mrb[7].mxu1  ;;  %879 = vrot.lane.b32.xlu0 %v1704_v33, %s1153_s15  ;;  %v1709_v9 = vld [vmem:[#allocation11_spill] sm:$0xff] }
  0xeb   :  { %v281_v5 = vmul.f32 %v1341_v62, %v135_v45  ;;  %v289_v21 = vmul.f32 %v1349_v27, %v167_v22  ;;  %v138_v52 = vadd.f32 %v137_v17, %v1368_v39  ;;  %v170_v53 = vadd.f32 %v169_v4, %v1368_v39  ;;  %1053 = vmatprep.mubr.msk.bf16.mxu1 %vm59_vm0, %v409_v6 }
  0xec   :  { %v391_v3 = vmul.f32 %v370_v7, %v1365_v38  ;;  %v284_v41 = vmul.f32 %v1343_v1, %v146_v0  ;;  %v292_v19 = vmul.f32 %v1370_v40, %v178_v37  ;;  %1054 = vmatmul.mubr.msk.bf16.vlgmr.msra.gmra.mrb[8].mxu1 %vm59_vm0, %v410_v13  ;;  %v390_v62 = vmul.f32 %v1359_v35, %v1365_v38  ;;  %v1708_v13 = vld [vmem:[#allocation10_spill] sm:$0xff] }
  0xed   :  { %v389_v27 = vmul.f32 %v1361_v36, %v1365_v38  ;;  %v282_v39 = vmul.f32 %v1339_v61, %v138_v52  ;;  %v290_v50 = vmul.f32 %v1347_v26, %v170_v53  ;;  %v399_v51 = vadd.f32 %v1388_v59, %v283_v43  ;;  %v40_v61 = vld [vmem:[%s1684_s1 + $0x40] sm:$0xff]  ;;  %v41_v26 = vld [vmem:[%s1684_s1 + $0x48] sm:$0xff] }
  0xee   :  { %v407_v25 = vadd.f32 %v391_v3, %v291_v44  ;;  %v400_v54 = vadd.f32 %v1385_v55, %v284_v41  ;;  %v408_v1 = vadd.f32 %v392_v58, %v292_v19  ;;  %v397_v40 = vadd.f32 %v1380_v49, %v281_v5  ;;  %v43_v49 = vld [vmem:[%s1684_s1 + $0x58] sm:$0xff]  ;;  %v1703_v59 = vld [vmem:[#allocation5_spill] sm:$0xff]  ;;  %883 = vrot.lane.b32.xlu0 %v1706_v24, %s1153_s15 }
  0xef   :  { %v405_v7 = vadd.f32 %v389_v27, %v289_v21  ;;  %v398_v60 = vadd.f32 %v1377_v48, %v282_v39  ;;  %v406_v34 = vadd.f32 %v390_v62, %v290_v50  ;;  %v696_v38 = vpack.c.bf16 %v41_v26, %v40_v61  ;;  %v42_v48 = vld [vmem:[%s1684_s1 + $0x50] sm:$0xff]  ;;  %877 = vrot.lane.b32.xlu1 %v1703_v59, %s1153_s15 }
  0xf0   :  { %v412_v35 = vpack.c.bf16 %v400_v54, %v399_v51  ;;  %v416_v63 = vpack.c.bf16 %v408_v1, %v407_v25  ;;  %v697_v55 = vpack.c.bf16 %v43_v49, %v42_v48 }
  0xf1   :  { %v411_v28 = vpack.c.bf16 %v398_v60, %v397_v40  ;;  %v415_v36 = vpack.c.bf16 %v406_v34, %v405_v7  ;;  %1069 = vmatprep.subr.bf16.mxu0 %v696_v38 }
  0xf2   :  { %1070 = vmatpush3.bf16.msra.mxu0 %v696_v38 }
  0xf3   :  { %1057 = vmatprep.mubr.msk.bf16.mxu1 %vm59_vm0, %v411_v28  ;;  %1071 = vmatprep.subr.bf16.mxu0 %v697_v55 }
  0xf4   :  { %1058 = vmatmul.mubr.msk.bf16.gmra.mrb[12].mxu1 %vm59_vm0, %v412_v35  ;;  %881 = vrot.lane.b32.xlu1 %v1705_v23, %s1153_s15 }
  0xf5   :  { %1061 = vmatprep.mubr.msk.bf16.mxu1 %vm59_vm0, %v413_v47 }
  0xf6   :  { %1072 = vmatpush3.bf16.msra.mxu0 %v697_v55 }
  0xf8   :  { %885 = vrot.lane.b32.xlu1 %v1707_v57, %s1153_s15 }
  0xfc   :  { %1062 = vmatmul.mubr.msk.bf16.gmra.mrb[16].mxu1 %vm59_vm0, %v414_v46  ;;  %v421_v46 = vsub.s32 1, %v1708_v13 }
  0xfd   :  { %1065 = vmatprep.mubr.msk.bf16.mxu1 %vm59_vm0, %v415_v36 }
  0xfe   :  { %v1465_v12 = vrot.slane %v1709_v9, %v421_v46 }
 0x104   :  { %1066 = vmatmul.mubr.msk.bf16.gmra.mrb[20].mxu1 %vm59_vm0, %v416_v63 }
 0x1bf   :  { %v1055_v10 = vpop.f32.mrb[8].mxu1 }
 0x1c0   :  { %v1468_v11 = vadd.f32 %v1055_v10, %v1465_v12  ;;  %v481_v16 = vpop.f32.mrb[9].mxu1 }
 0x1c1   :  { %v1471_v31 = vadd.f32 %v481_v16, %v1465_v12  ;;  %v1056_v56 = vpop.f32.mrb[10].mxu1 }
 0x1c2   :  { %v546_v6 = vmul.f32 %v1468_v11, %v1468_v11  ;;  %v1476_v47 = vadd.f32 %v1056_v56, %v1465_v12  ;;  %v484_v45 = vpop.f32.mrb[11].mxu1 }
 0x1c3   :  { %v544_v22 = vmul.f32 %v1471_v31, %v1471_v31  ;;  %v1481_v32 = vadd.f32 %v484_v45, %v1465_v12 }
 0x1c4   :  { %v562_v42 = vmul.f32 %v546_v6, %v1468_v11  ;;  %v547_v43 = vmul.f32 %v1476_v47, %v1476_v47 }
 0x1c5   :  { %v560_v44 = vmul.f32 %v544_v22, %v1471_v31  ;;  %v545_v0 = vmul.f32 %v1481_v32, %v1481_v32 }
 0x1c6   :  { %v578_v37 = vmul.f32 0.044715, %v562_v42  ;;  %v563_v17 = vmul.f32 %v547_v43, %v1476_v47 }
 0x1c7   :  { %v576_v4 = vmul.f32 0.044715, %v560_v44  ;;  %v561_v5 = vmul.f32 %v545_v0, %v1481_v32  ;;  %v1059_v21 = vpop.f32.mrb[12].mxu1 }
 0x1c8   :  { %v594_v52 = vadd.f32 %v578_v37, %v1468_v11  ;;  %v579_v53 = vmul.f32 0.044715, %v563_v17  ;;  %v1493_v58 = vadd.f32 %v1059_v21, %v1465_v12  ;;  %v497_v3 = vpop.f32.mrb[13].mxu1 }
 0x1c9   :  { %v592_v41 = vadd.f32 %v576_v4, %v1471_v31  ;;  %v577_v19 = vmul.f32 0.044715, %v561_v5  ;;  %v1497_v62 = vadd.f32 %v497_v3, %v1465_v12  ;;  %v1060_v27 = vpop.f32.mrb[14].mxu1 }
 0x1ca   :  { %v610_v39 = vmul.f32 0.7978846, %v594_v52  ;;  %v595_v50 = vadd.f32 %v579_v53, %v1476_v47  ;;  %v550_v51 = vmul.f32 %v1493_v58, %v1493_v58  ;;  %v1503_v25 = vadd.f32 %v1060_v27, %v1465_v12  ;;  %v500_v54 = vpop.f32.mrb[15].mxu1 }
 0x1cb   :  { %v608_v1 = vmul.f32 0.7978846, %v592_v41  ;;  %v593_v40 = vadd.f32 %v577_v19, %v1481_v32  ;;  %v548_v7 = vmul.f32 %v1497_v62, %v1497_v62  ;;  %v1509_v60 = vadd.f32 %v500_v54, %v1465_v12 }
 0x1cc   :  { %1100 = vtanh.f32 %v610_v39  ;;  %v611_v34 = vmul.f32 0.7978846, %v595_v50  ;;  %v566_v35 = vmul.f32 %v550_v51, %v1493_v58  ;;  %v551_v63 = vmul.f32 %v1503_v25, %v1503_v25 }
 0x1cd   :  { %1102 = vtanh.f32 %v608_v1  ;;  %v609_v28 = vmul.f32 0.7978846, %v593_v40  ;;  %v564_v36 = vmul.f32 %v548_v7, %v1497_v62  ;;  %v549_v61 = vmul.f32 %v1509_v60, %v1509_v60 }
 0x1ce   :  { %1104 = vtanh.f32 %v611_v34  ;;  %v582_v26 = vmul.f32 0.044715, %v566_v35  ;;  %v567_v38 = vmul.f32 %v551_v63, %v1503_v25 }
 0x1cf   :  { %1106 = vtanh.f32 %v609_v28  ;;  %v580_v48 = vmul.f32 0.044715, %v564_v36  ;;  %v565_v49 = vmul.f32 %v549_v61, %v1509_v60  ;;  %v1063_v55 = vpop.f32.mrb[16].mxu1 }
 0x1d0   :  { %v598_v59 = vadd.f32 %v582_v26, %v1493_v58  ;;  %v583_v33 = vmul.f32 0.044715, %v567_v38  ;;  %v1521_v23 = vadd.f32 %v1063_v55, %v1465_v12  ;;  %v513_v24 = vpop.f32.mrb[17].mxu1 }
 0x1d1   :  { %v596_v57 = vadd.f32 %v580_v48, %v1497_v62  ;;  %v581_v46 = vmul.f32 0.044715, %v565_v49  ;;  %v1525_v10 = vadd.f32 %v513_v24, %v1465_v12  ;;  %v1064_v16 = vpop.f32.mrb[18].mxu1 }
 0x1d2   :  { %v614_v56 = vmul.f32 0.7978846, %v598_v59  ;;  %v599_v6 = vadd.f32 %v583_v33, %v1503_v25  ;;  %v554_v45 = vmul.f32 %v1521_v23, %v1521_v23  ;;  %v1531_v22 = vadd.f32 %v1064_v16, %v1465_v12  ;;  %v516_v42 = vpop.f32.mrb[19].mxu1 }
 0x1d3   :  { %v612_v43 = vmul.f32 0.7978846, %v596_v57  ;;  %v597_v44 = vadd.f32 %v581_v46, %v1509_v60  ;;  %v552_v0 = vmul.f32 %v1525_v10, %v1525_v10  ;;  %v1537_v37 = vadd.f32 %v516_v42, %v1465_v12 }
 0x1d4   :  { %1108 = vtanh.f32 %v614_v56  ;;  %v615_v17 = vmul.f32 0.7978846, %v599_v6  ;;  %v570_v4 = vmul.f32 %v554_v45, %v1521_v23  ;;  %v555_v5 = vmul.f32 %v1531_v22, %v1531_v22 }
 0x1d5   :  { %1110 = vtanh.f32 %v612_v43  ;;  %v613_v21 = vmul.f32 0.7978846, %v597_v44  ;;  %v568_v52 = vmul.f32 %v552_v0, %v1525_v10  ;;  %v553_v53 = vmul.f32 %v1537_v37, %v1537_v37 }
 0x1d6   :  { %v1101_v3 = vpop.eup %1100  ;;  %1112 = vtanh.f32 %v615_v17  ;;  %v586_v41 = vmul.f32 0.044715, %v570_v4  ;;  %v571_v19 = vmul.f32 %v555_v5, %v1531_v22 }
 0x1d7   :  { %v1103_v27 = vpop.eup %1102  ;;  %v642_v39 = vadd.f32 1.0, %v1101_v3  ;;  %1114 = vtanh.f32 %v613_v21  ;;  %v584_v50 = vmul.f32 0.044715, %v568_v52  ;;  %v569_v51 = vmul.f32 %v553_v53, %v1537_v37  ;;  %v1067_v54 = vpop.f32.mrb[20].mxu1 }
 0x1d8   :  { %v1105_v1 = vpop.eup %1104  ;;  %v640_v40 = vadd.f32 1.0, %v1103_v27  ;;  %v602_v7 = vadd.f32 %v586_v41, %v1521_v23  ;;  %v587_v34 = vmul.f32 0.044715, %v571_v19  ;;  %v1549_v35 = vadd.f32 %v1067_v54, %v1465_v12  ;;  %v529_v63 = vpop.f32.mrb[21].mxu1 }
 0x1d9   :  { %v1107_v28 = vpop.eup %1106  ;;  %v658_v36 = vmul.f32 0.5, %v642_v39  ;;  %v643_v61 = vadd.f32 1.0, %v1105_v1  ;;  %v600_v26 = vadd.f32 %v584_v50, %v1525_v10  ;;  %v585_v38 = vmul.f32 0.044715, %v569_v51  ;;  %v1068_v48 = vpop.f32.mrb[22].mxu1 }
 0x1da   :  { %v656_v49 = vmul.f32 0.5, %v640_v40  ;;  %v641_v55 = vadd.f32 1.0, %v1107_v28  ;;  %v618_v59 = vmul.f32 0.7978846, %v602_v7  ;;  %v603_v33 = vadd.f32 %v587_v34, %v1531_v22  ;;  %v532_v24 = vpop.f32.mrb[23].mxu1 }
 0x1db   :  { %v674_v57 = vmul.f32 %v658_v36, %v1468_v11  ;;  %v659_v46 = vmul.f32 0.5, %v643_v61  ;;  %v616_v16 = vmul.f32 0.7978846, %v600_v26  ;;  %v601_v56 = vadd.f32 %v585_v38, %v1537_v37 }
 0x1dc   :  { %v672_v6 = vmul.f32 %v656_v49, %v1471_v31  ;;  %v657_v45 = vmul.f32 0.5, %v641_v55  ;;  %1116 = vtanh.f32 %v618_v59  ;;  %v619_v42 = vmul.f32 0.7978846, %v603_v33 }
 0x1dd   :  { %v675_v43 = vmul.f32 %v659_v46, %v1476_v47  ;;  %1118 = vtanh.f32 %v616_v16  ;;  %v617_v44 = vmul.f32 0.7978846, %v601_v56  ;;  %v558_v0 = vmul.f32 %v1549_v35, %v1549_v35 }
 0x1de   :  { %v1109_v17 = vpop.eup %1108  ;;  %v673_v4 = vmul.f32 %v657_v45, %v1481_v32  ;;  %1120 = vtanh.f32 %v619_v42  ;;  %v1561_v11 = vadd.f32 %v529_v63, %v1465_v12  ;;  %v1564_v5 = vadd.f32 %v1068_v48, %v1465_v12 }
 0x1df   :  { %v1111_v31 = vpop.eup %1110  ;;  %v689_v21 = vpack.c.bf16 %v675_v43, %v674_v57  ;;  %v646_v52 = vadd.f32 1.0, %v1109_v17  ;;  %1122 = vtanh.f32 %v617_v44  ;;  %v574_v47 = vmul.f32 %v558_v0, %v1549_v35 }
 0x1e0   :  { %v1113_v53 = vpop.eup %1112  ;;  %v644_v3 = vadd.f32 1.0, %v1111_v31  ;;  %v556_v41 = vmul.f32 %v1561_v11, %v1561_v11  ;;  %v559_v32 = vmul.f32 %v1564_v5, %v1564_v5  ;;  %v1572_v19 = vadd.f32 %v532_v24, %v1465_v12 }
 0x1e1   :  { %v1115_v27 = vpop.eup %1114  ;;  %v662_v39 = vmul.f32 0.5, %v646_v52  ;;  %v647_v50 = vadd.f32 1.0, %v1113_v53  ;;  %v590_v51 = vmul.f32 0.044715, %v574_v47  ;;  %v688_v54 = vpack.c.bf16 %v673_v4, %v672_v6 }
 0x1e2   :  { %v660_v1 = vmul.f32 0.5, %v644_v3  ;;  %v645_v40 = vadd.f32 1.0, %v1115_v27  ;;  %v572_v7 = vmul.f32 %v556_v41, %v1561_v11  ;;  %v575_v34 = vmul.f32 %v559_v32, %v1564_v5 }
 0x1e3   :  { %v663_v63 = vmul.f32 0.5, %v647_v50  ;;  %v606_v28 = vadd.f32 %v590_v51, %v1549_v35  ;;  %v557_v36 = vmul.f32 %v1572_v19, %v1572_v19  ;;  %1073 = vmatprep.mubr.msk.bf16.mxu0 %vm59_vm0, %v688_v54  ;;  %v678_v38 = vmul.f32 %v662_v39, %v1493_v58 }
 0x1e4   :  { %v661_v12 = vmul.f32 0.5, %v645_v40  ;;  %v588_v61 = vmul.f32 0.044715, %v572_v7  ;;  %v591_v26 = vmul.f32 0.044715, %v575_v34  ;;  %1074 = vmatmul.mubr.msk.bf16.vlgmr.msra.gmra.mrb[8].mxu0 %vm59_vm0, %v689_v21  ;;  %v676_v33 = vmul.f32 %v660_v1, %v1497_v62 }
 0x1e5   :  { %v679_v48 = vmul.f32 %v663_v63, %v1503_v25  ;;  %v622_v49 = vmul.f32 0.7978846, %v606_v28  ;;  %v573_v55 = vmul.f32 %v557_v36, %v1572_v19 }
 0x1e6   :  { %v1117_v59 = vpop.eup %1116  ;;  %v677_v24 = vmul.f32 %v661_v12, %v1509_v60  ;;  %v604_v57 = vadd.f32 %v588_v61, %v1561_v11  ;;  %v607_v46 = vadd.f32 %v591_v26, %v1564_v5 }
 0x1e7   :  { %v1119_v16 = vpop.eup %1118  ;;  %v650_v56 = vadd.f32 1.0, %v1117_v59  ;;  %1124 = vtanh.f32 %v622_v49  ;;  %v589_v6 = vmul.f32 0.044715, %v573_v55  ;;  %v691_v45 = vpack.c.bf16 %v679_v48, %v678_v38  ;;  %v856_v49 = vpop.permute.xlu0 %855 }
 0x1e8   :  { %v1121_v58 = vpop.eup %1120  ;;  %v648_v42 = vadd.f32 1.0, %v1119_v16  ;;  %v620_v25 = vmul.f32 0.7978846, %v604_v57  ;;  %v623_v43 = vmul.f32 0.7978846, %v607_v46  ;;  %v690_v44 = vpack.c.bf16 %v677_v24, %v676_v33  ;;  %v858_v55 = vpop.permute.xlu1 %857 }
 0x1e9   :  { %v1123_v0 = vpop.eup %1122  ;;  %v666_v17 = vmul.f32 0.5, %v650_v56  ;;  %v651_v4 = vadd.f32 1.0, %v1121_v58  ;;  %v605_v62 = vadd.f32 %v589_v6, %v1572_v19  ;;  %v700_v48 = vsub.s32 3, %v1708_v13 }
 0x1ea   :  { %v664_v60 = vmul.f32 0.5, %v648_v42  ;;  %v649_v31 = vadd.f32 1.0, %v1123_v0  ;;  %1126 = vtanh.f32 %v620_v25  ;;  %1077 = vmatprep.mubr.msk.bf16.mxu0 %vm59_vm0, %v690_v44 }
 0x1eb   :  { %v667_v21 = vmul.f32 0.5, %v651_v4  ;;  %1128 = vtanh.f32 %v623_v43  ;;  %v621_v52 = vmul.f32 0.7978846, %v605_v62  ;;  %v682_v53 = vmul.f32 %v666_v17, %v1521_v23 }
 0x1ec   :  { %v665_v47 = vmul.f32 0.5, %v649_v31  ;;  %1078 = vmatmul.mubr.msk.bf16.gmra.mrb[12].mxu0 %vm59_vm0, %v691_v45  ;;  %v680_v41 = vmul.f32 %v664_v60, %v1525_v10  ;;  %v1605_v59 = vrot.slane %v1709_v9, %v700_v48  ;;  %v862_v24 = vpop.permute.xlu1 %861  ;;  %v1132_v48 = vld [vmem:[%s1683_s0 + $0x50] sm:$0xff] }
 0x1ed   :  { %v683_v3 = vmul.f32 %v667_v21, %v1531_v22  ;;  %1130 = vtanh.f32 %v621_v52 }
 0x1ee   :  { %v681_v32 = vmul.f32 %v665_v47, %v1537_v37 }
 0x1ef   :  { %v693_v27 = vpack.c.bf16 %v683_v3, %v682_v53 }
 0x1f0   :  { %v692_v39 = vpack.c.bf16 %v681_v32, %v680_v41  ;;  %v866_v44 = vpop.permute.xlu1 %865 }
 0x1f1   :  { %v1125_v50 = vpop.eup %1124 }
 0x1f2   :  { %v654_v51 = vadd.f32 1.0, %v1125_v50  ;;  %1081 = vmatprep.mubr.msk.bf16.mxu0 %vm59_vm0, %v692_v39 }
 0x1f4   :  { %v1127_v54 = vpop.eup %1126  ;;  %1082 = vmatmul.mubr.msk.bf16.gmra.mrb[16].mxu0 %vm59_vm0, %v693_v27  ;;  %v670_v7 = vmul.f32 0.5, %v654_v51  ;;  %v870_v51 = vpop.permute.xlu1 %869 }
 0x1f5   :  { %v1129_v1 = vpop.eup %1128  ;;  %v652_v40 = vadd.f32 1.0, %v1127_v54 }
 0x1f6   :  { %v655_v23 = vadd.f32 1.0, %v1129_v1  ;;  %v686_v10 = vmul.f32 %v670_v7, %v1549_v35  ;;  %v860_v35 = vpop.permute.xlu0 %859 }
 0x1f7   :  { %v1131_v34 = vpop.eup %1130  ;;  %v668_v22 = vmul.f32 0.5, %v652_v40 }
 0x1f8   :  { %v671_v63 = vmul.f32 0.5, %v655_v23  ;;  %v653_v28 = vadd.f32 1.0, %v1131_v34 }
 0x1f9   :  { %v684_v12 = vmul.f32 %v668_v22, %v1561_v11 }
 0x1fa   :  { %v687_v37 = vmul.f32 %v671_v63, %v1564_v5  ;;  %v669_v36 = vmul.f32 0.5, %v653_v28  ;;  %v864_v45 = vpop.permute.xlu0 %863 }
 0x1fc   :  { %v685_v61 = vmul.f32 %v669_v36, %v1572_v19  ;;  %v695_v26 = vpack.c.bf16 %v687_v37, %v686_v10 }
 0x1fe   :  { %v694_v38 = vpack.c.bf16 %v685_v61, %v684_v12  ;;  %v868_v53 = vpop.permute.xlu0 %867 }
 0x200   :  { %1085 = vmatprep.mubr.msk.bf16.mxu0 %vm59_vm0, %v694_v38 }
 0x201   :  { %1086 = vmatmul.mubr.msk.bf16.gmra.mrb[20].mxu0 %vm59_vm0, %v695_v26 }
 0x202   :  { %v872_v36 = vpop.permute.xlu0 %871 }
 0x2b7   :  { %v1075_v5 = vpop.f32.mrb[8].mxu0 }
 0x2b8   :  { %v769_v33 = vadd.f32 %v1075_v5, %v1605_v59  ;;  %v760_v11 = vpop.f32.mrb[9].mxu0  ;;  %v874_v5 = vpop.permute.xlu1 %873 }
 0x2b9   :  { %v761_v19 = vadd.f32 %v760_v11, %v1605_v59  ;;  %v1076_v57 = vpop.f32.mrb[10].mxu0 }
 0x2ba   :  { %v825_v46 = vsub.f32 %v1216_v14, %v769_v33  ;;  %v772_v16 = vadd.f32 %v1076_v57, %v1605_v59  ;;  %v763_v56 = vpop.f32.mrb[11].mxu0 }
 0x2bb   :  { %v823_v13 = vsub.f32 %v1184_v2, %v761_v19  ;;  %v764_v6 = vadd.f32 %v763_v56, %v1605_v59 }
 0x2bc   :  { %v826_v9 = vsub.f32 %v1221_v15, %v772_v16  ;;  %v841_v25 = vand.u32 2147483647, %v825_v46  ;;  %v1134_v16 = vld [vmem:[%s1683_s0 + $0x58] sm:$0xff] }
 0x2bd   :  { %v839_v58 = vand.u32 2147483647, %v823_v13  ;;  %v824_v42 = vsub.f32 %v1196_v8, %v764_v6 }
 0x2be   :  { %v842_v43 = vand.u32 2147483647, %v826_v9  ;;  %v905_v2 = vmul.f32 %v860_v35, %v841_v25  ;;  %v1135_v9 = vld [vmem:[%s1683_s0 + $0x48] sm:$0xff]  ;;  %v876_v25 = vpop.permute.xlu0 %875 }
 0x2bf   :  { %v903_v0 = vmul.f32 %v856_v49, %v839_v58  ;;  %v840_v17 = vand.u32 2147483647, %v824_v42  ;;  %v1079_v4 = vpop.f32.mrb[12].mxu0 }
 0x2c0   :  { %v785_v14 = vadd.f32 %v1079_v4, %v1605_v59  ;;  %v776_v62 = vpop.f32.mrb[13].mxu0  ;;  %v906_v15 = vmul.f32 %v862_v24, %v842_v43  ;;  %v923_v54 = vsel %vm919_vm1, %v905_v2, 0.0  ;;  %v1133_v24 = vld [vmem:[%s1683_s0 + $0x40] sm:$0xff] }
 0x2c1   :  { %v904_v60 = vmul.f32 %v858_v55, %v840_v17  ;;  %v777_v31 = vadd.f32 %v776_v62, %v1605_v59  ;;  %v1080_v21 = vpop.f32.mrb[14].mxu0  ;;  %v920_v3 = vsel %vm919_vm1, %v903_v0, 0.0 }
 0x2c2   :  { %v829_v52 = vsub.f32 %v1272_v29, %v785_v14  ;;  %v788_v8 = vadd.f32 %v1080_v21, %v1605_v59  ;;  %v779_v47 = vpop.f32.mrb[15].mxu0  ;;  %v925_v23 = vsel %vm919_vm1, %v906_v15, 0.0  ;;  %v878_v14 = vpop.permute.xlu1 %877 }
 0x2c3   :  { %v921_v41 = vsel %vm919_vm1, %v904_v60, 0.0  ;;  %v827_v32 = vsub.f32 %v1236_v18, %v777_v31  ;;  %v780_v27 = vadd.f32 %v779_v47, %v1605_v59 }
 0x2c4   :  { %v922_v39 = vadd.f32 %v921_v41, %v920_v3  ;;  %v830_v50 = vsub.f32 %v1279_v30, %v788_v8  ;;  %v845_v40 = vand.u32 2147483647, %v829_v52  ;;  %v880_v41 = vpop.permute.xlu0 %879 }
 0x2c5   :  { %v843_v1 = vand.u32 2147483647, %v827_v32  ;;  %v828_v29 = vsub.f32 %v1242_v20, %v780_v27 }
 0x2c6   :  { %v924_v7 = vadd.f32 %v923_v54, %v922_v39  ;;  %v846_v63 = vand.u32 2147483647, %v830_v50  ;;  %v909_v61 = vmul.f32 %v868_v53, %v845_v40  ;;  %v882_v40 = vpop.permute.xlu1 %881 }
 0x2c7   :  { %v907_v34 = vmul.f32 %v864_v45, %v843_v1  ;;  %v844_v22 = vand.u32 2147483647, %v828_v29  ;;  %v1083_v28 = vpop.f32.mrb[16].mxu0 }
 0x2c8   :  { %v926_v18 = vadd.f32 %v925_v23, %v924_v7  ;;  %v801_v10 = vadd.f32 %v1083_v28, %v1605_v59  ;;  %v792_v37 = vpop.f32.mrb[17].mxu0  ;;  %v910_v11 = vmul.f32 %v870_v51, %v846_v63  ;;  %v931_v13 = vsel %vm919_vm1, %v909_v61, 0.0  ;;  %v1136_v51 = vld [vmem:[%s1683_s0 + $0x70] sm:$0xff]  ;;  %v1137_v23 = vld [vmem:[%s1683_s0 + $0x60] sm:$0xff]  ;;  %v1138_v63 = vld [vmem:[%s1683_s0 + $0x78] sm:$0xff] }
 0x2c9   :  { %v927_v30 = vsel %vm919_vm1, %v907_v34, 0.0  ;;  %v908_v12 = vmul.f32 %v866_v44, %v844_v22  ;;  %v793_v26 = vadd.f32 %v792_v37, %v1605_v59  ;;  %v1084_v20 = vpop.f32.mrb[18].mxu0 }
 0x2ca   :  { %v928_v38 = vadd.f32 %v927_v30, %v926_v18  ;;  %v833_v49 = vsub.f32 %v1132_v48, %v801_v10  ;;  %v804_v55 = vadd.f32 %v1084_v20, %v1605_v59  ;;  %v795_v35 = vpop.f32.mrb[19].mxu0  ;;  %v933_v43 = vsel %vm919_vm1, %v910_v11, 0.0  ;;  %v1139_v10 = vld [vmem:[%s1683_s0 + $0x68] sm:$0xff]  ;;  %v884_v30 = vpop.permute.xlu0 %883 }
 0x2cb   :  { %v929_v33 = vsel %vm919_vm1, %v908_v12, 0.0  ;;  %v831_v19 = vsub.f32 %v1133_v24, %v793_v26  ;;  %v796_v57 = vadd.f32 %v795_v35, %v1605_v59  ;;  %v886_v20 = vpop.permute.xlu1 %885 }
 0x2cc   :  { %v930_v46 = vadd.f32 %v929_v33, %v928_v38  ;;  %v834_v56 = vsub.f32 %v1134_v16, %v804_v55  ;;  %v849_v58 = vand.u32 2147483647, %v833_v49 }
 0x2cd   :  { %v847_v6 = vand.u32 2147483647, %v831_v19  ;;  %v832_v45 = vsub.f32 %v1135_v9, %v796_v57 }
 0x2ce   :  { %v932_v42 = vadd.f32 %v931_v13, %v930_v46  ;;  %v850_v17 = vand.u32 2147483647, %v834_v56  ;;  %v913_v2 = vmul.f32 %v876_v25, %v849_v58 }
 0x2cf   :  { %v911_v44 = vmul.f32 %v872_v36, %v847_v6  ;;  %v848_v0 = vand.u32 2147483647, %v832_v45 }
 0x2d0   :  { %v934_v4 = vadd.f32 %v933_v43, %v932_v42  ;;  %v914_v15 = vmul.f32 %v878_v14, %v850_v17  ;;  %v939_v47 = vsel %vm919_vm1, %v913_v2, 0.0 }
 0x2d1   :  { %v935_v62 = vsel %vm919_vm1, %v911_v44, 0.0  ;;  %v912_v60 = vmul.f32 %v874_v5, %v848_v0 }
 0x2d2   :  { %v936_v31 = vadd.f32 %v935_v62, %v934_v4  ;;  %v941_v50 = vsel %vm919_vm1, %v914_v15, 0.0 }
 0x2d3   :  { %v937_v21 = vsel %vm919_vm1, %v912_v60, 0.0 }
 0x2d4   :  { %v938_v52 = vadd.f32 %v937_v21, %v936_v31  ;;  %v1087_v8 = vpop.f32.mrb[20].mxu0 }
 0x2d5   :  { %v817_v53 = vadd.f32 %v1087_v8, %v1605_v59  ;;  %v808_v3 = vpop.f32.mrb[21].mxu0 }
 0x2d6   :  { %v940_v32 = vadd.f32 %v939_v47, %v938_v52  ;;  %v809_v27 = vadd.f32 %v808_v3, %v1605_v59  ;;  %v1088_v39 = vpop.f32.mrb[22].mxu0 }
 0x2d7   :  { %v837_v54 = vsub.f32 %v1136_v51, %v817_v53  ;;  %v820_v1 = vadd.f32 %v1088_v39, %v1605_v59  ;;  %v811_v29 = vpop.f32.mrb[23].mxu0 }
 0x2d8   :  { %v942_v7 = vadd.f32 %v941_v50, %v940_v32  ;;  %v835_v34 = vsub.f32 %v1137_v23, %v809_v27  ;;  %v812_v22 = vadd.f32 %v811_v29, %v1605_v59 }
 0x2d9   :  { %v838_v28 = vsub.f32 %v1138_v63, %v820_v1  ;;  %v853_v36 = vand.u32 2147483647, %v837_v54 }
 0x2da   :  { %v851_v18 = vand.u32 2147483647, %v835_v34  ;;  %v836_v37 = vsub.f32 %v1139_v10, %v812_v22 }
 0x2db   :  { %v854_v26 = vand.u32 2147483647, %v838_v28  ;;  %v917_v48 = vmul.f32 %v884_v30, %v853_v36 }
 0x2dc   :  { %v915_v12 = vmul.f32 %v880_v41, %v851_v18  ;;  %v852_v61 = vand.u32 2147483647, %v836_v37 }
 0x2dd   :  { %v918_v35 = vmul.f32 %v886_v20, %v854_v26  ;;  %v947_v33 = vsel %vm919_vm1, %v917_v48, 0.0 }
 0x2de   :  { %v943_v38 = vsel %vm919_vm1, %v915_v12, 0.0  ;;  %v916_v59 = vmul.f32 %v882_v40, %v852_v61 }
 0x2df   :  { %v944_v49 = vadd.f32 %v943_v38, %v942_v7  ;;  %v949_v24 = vsel %vm919_vm1, %v918_v35, 0.0 }
 0x2e0   :  { %v945_v55 = vsel %vm919_vm1, %v916_v59, 0.0 }
 0x2e1   :  { %v946_v5 = vadd.f32 %v945_v55, %v944_v49 }
 0x2e3   :  { %v948_v11 = vadd.f32 %v947_v33, %v946_v5 }
 0x2e5   :  { %v950_v19 = vadd.f32 %v949_v24, %v948_v11 }
 0x2e7   :  { %951 = vadd.xlane.f32.xlu0 %v950_v19 }
 0x374   :  { %v952_v57 = vpop.xlane.xlu0 %951 }
 0x375   :  { %v953_v46 = vrot.slane %v952_v57, 4 }
 0x377   :  { %v954_v16 = vadd.f32 %v953_v46, %v952_v57 }
 0x379   :  { %v955_v56 = vrot.slane %v954_v16, 2 }
 0x37b   :  { %v956_v13 = vadd.f32 %v955_v56, %v954_v16 }
 0x37d   :  { %v957_v6 = vrot.slane %v956_v13, 1 }
 0x37f   :  { %v958_v9 = vadd.f32 %v957_v6, %v956_v13 }
 0x381   :  { %1093 = vpush %v958_v9 }
 0x3b2   :  { %s1094_s0 = spop %1093 }
 0x3b3   :  { %961 = sst [smem:[#allocation2]] %s1094_s0 }
 0x3b4   :  { %1149 = shalt.err (!%p1146_p2)
}
 0x3b5   :  { %s1154_s10 = smov [#allocation2]  }
 0x3b6   :  { %969 = dma.smem_to_hbm %s1154_s10, 16, %s1686_s3, [#allocation3]  }
 0x3b7   :  { %1150 = dma.done.wait [#allocation3], 16  }
 0x3b8   :  { %1151 = vsyncadd [#allocation3], 4294967280 }
 0x3b9   :  { %973 = sfence }
 0x3ba   :  { %974 = vsyncpa [#allocation3], 1 }

</bundles_post_ra>
